<compile_context>
chip_gen: v7x
topology: tpu7x:2x2x1
jax: 0.10.0
libtpu: 0.0.40
codegen_flags: <defaults>
</compile_context>

<pallas_src>
import functools

import jax
import jax.numpy as jnp
from jax.experimental import pallas as pl
from jax.experimental.pallas import tpu as pltpu

_F32_BYTES = 4


def _kl_div_kernel(p_ref, q_ref, out_ref, *, batch, row_tile):
    # Upcast in-kernel (free on the VPU); HBM traffic stays at the input dtype.
    p = p_ref[...].astype(jnp.float32)
    q = q_ref[...].astype(jnp.float32)

    # Numerically stable softmax statistics along the lane (last) axis.
    p_shift = p - jnp.max(p, axis=-1, keepdims=True)
    q_shift = q - jnp.max(q, axis=-1, keepdims=True)
    exp_p = jnp.exp(p_shift)
    sum_p = jnp.sum(exp_p, axis=-1, keepdims=True)
    sum_q = jnp.sum(jnp.exp(q_shift), axis=-1, keepdims=True)

    # Per-row KL:
    #   sum_n softmax(p) * (log_softmax(p) - log_softmax(q))
    # = (1/sum_p) * sum_n exp_p*(p_shift - q_shift)  -  (log sum_p - log sum_q)
    # No explicit softmax(p)/log_softmax(p)/log_softmax(q) arrays.
    s = jnp.sum(exp_p * (p_shift - q_shift), axis=-1, keepdims=True)
    inv_sum_p = pl.reciprocal(sum_p, approx=True)            # EUP slot
    inv_sum_p = inv_sum_p * (2.0 - sum_p * inv_sum_p)         # 1 Newton step, (rows,1) only
    row_kl = s * inv_sum_p - (jnp.log(sum_p) - jnp.log(sum_q))

    # Mask rows past the true batch size (the last grid block may overhang B;
    # its out-of-bounds rows contain garbage).
    row0 = pl.program_id(0) * row_tile
    row_ids = row0 + jax.lax.broadcasted_iota(jnp.int32, row_kl.shape, 0)
    row_kl = jnp.where(row_ids < batch, row_kl, 0.0)

    # Partial KL sum over this row tile; broadcast into the lane-dense (1, 128)
    # output block (wrapper reads lane 0 of each block).
    tile_sum = jnp.sum(row_kl)
    out_ref[...] = jnp.full(out_ref.shape, tile_sum, dtype=out_ref.dtype)


def _round_down(x, m):
    return (x // m) * m


def _vmem_capacity_bytes():
    try:
        return int(pltpu.get_tpu_info().vmem_capacity_bytes)
    except Exception:
        # Conservative default: v7x has the smallest per-TC VMEM (64 MiB).
        return 64 * 1024 * 1024


def _pick_row_tile(B, N, dtype, vmem_capacity):
    """Largest sublane-aligned row tile whose working set fits the VMEM budget."""
    itemsize = jnp.dtype(dtype).itemsize
    # Native sublane packing: f32 -> 8 rows, bf16/f16 -> 16, int8/fp8 -> 32.
    sublane = max(8, 32 // itemsize)

    # Working set per tile row:
    #   2 inputs x 2 pipeline buffers (input dtype) + ~3 full-width f32 temporaries.
    per_row_bytes = N * (4 * itemsize + 3 * _F32_BYTES)
    budget = int(0.55 * vmem_capacity)
    cap = max(_round_down(budget // per_row_bytes, sublane), sublane)

    # Keep each input block around capacity/16 (8 MiB on 128 MiB parts, 4 MiB on v7x).
    per_input_cap_rows = max((vmem_capacity // 16) // (N * itemsize), sublane)
    cap = min(cap, max(_round_down(per_input_cap_rows, sublane), sublane), 4096)

    # v7x megacore: keep >= 2 grid blocks when the batch is big enough so the
    # "parallel" axis can be sharded across both TensorCores.
    if B >= 2 * sublane:
        cap = min(cap, max(_round_down(B // 2, sublane), sublane))

    if cap >= B:
        return B  # single full-extent block (always layout-legal, no masking needed)
    return cap


def kl_div_loss(p, q, *, row_tile=None):
    """Pallas implementation of KLDivLoss.forward(p, q) for 2D (B, N) inputs."""
    assert p.shape == q.shape and p.ndim == 2, "expects 2D (B, N) inputs"
    B, N = p.shape
    itemsize = jnp.dtype(p.dtype).itemsize
    vmem_capacity = _vmem_capacity_bytes()
    if row_tile is None:
        row_tile = _pick_row_tile(B, N, p.dtype, vmem_capacity)
    num_blocks = int(pl.cdiv(B, row_tile))

    # Derive the scoped-VMEM limit from the actual tile footprint (+25% headroom),
    # clamped under the physical capacity (matters on v7x's 64 MiB parts; the
    # explicit override also matters on v5e, whose scoped default is only 16 MiB).
    block_in = row_tile * N * itemsize
    block_f32 = row_tile * N * _F32_BYTES
    out_bytes = num_blocks * 128 * _F32_BYTES
    need = 4 * block_in + 3 * block_f32 + 2 * out_bytes + (1 << 20)
    vmem_limit = int(min(0.85 * vmem_capacity, max(32 * 1024 * 1024, 1.25 * need)))

    kernel = functools.partial(_kl_div_kernel, batch=B, row_tile=row_tile)

    partials = pl.pallas_call(
        kernel,
        out_shape=jax.ShapeDtypeStruct((1, num_blocks * 128), jnp.float32),
        grid_spec=pltpu.PrefetchScalarGridSpec(
            num_scalar_prefetch=0,
            grid=(num_blocks,),
            in_specs=[
                pl.BlockSpec((row_tile, N), lambda i: (i, 0)),
                pl.BlockSpec((row_tile, N), lambda i: (i, 0)),
            ],
            # One lane-dense 128-wide block per grid step -> independent writes,
            # so the grid axis can be "parallel" (v7x megacore sharding).
            out_specs=pl.BlockSpec((1, 128), lambda i: (0, i)),
        ),
        compiler_params=pltpu.CompilerParams(
            dimension_semantics=("parallel",),
            vmem_limit_bytes=vmem_limit,
        ),
        cost_estimate=pl.CostEstimate(
            flops=8 * B * N,
            transcendentals=2 * B * N,
            bytes_accessed=2 * B * N * itemsize + num_blocks * 128 * _F32_BYTES,
        ),
    )(p, q)

    # Lane 0 of each 128-wide block holds that block's partial sum.
    block_sums = partials.reshape(num_blocks, 128)[:, 0]
    # 'batchmean' divides by the size of the first dimension.
    return jnp.sum(block_sums) / jnp.float32(B)


def _reference(p, q):
    p32 = p.astype(jnp.float32)
    q32 = q.astype(jnp.float32)
    ps = jax.nn.softmax(p32, axis=-1)
    log_ps = jax.nn.log_softmax(p32, axis=-1)
    log_qs = jax.nn.log_softmax(q32, axis=-1)
    return jnp.sum(ps * (log_ps - log_qs)) / p.shape[0]


if __name__ == "__main__":
    key = jax.random.PRNGKey(0)
    k1, k2, k3, k4, k5, k6, k7, k8 = jax.random.split(key, 8)

    # 1) Small shape consistent with the module's forward (2D, softmax over last dim).
    B, N = 8, 128
    p = jax.random.normal(k1, (B, N), dtype=jnp.float32)
    q = jax.random.normal(k2, (B, N), dtype=jnp.float32)
    loss = kl_div_loss(p, q)
    jax.block_until_ready(loss)
    ref = _reference(p, q)
    assert jnp.allclose(loss, ref, rtol=1e-3, atol=1e-6), (loss, ref)

    # 2) Multi-block path (per-block partial sums + "parallel" grid axis).
    B2, N2 = 32, 256
    p2 = jax.random.normal(k3, (B2, N2), dtype=jnp.float32)
    q2 = jax.random.normal(k4, (B2, N2), dtype=jnp.float32)
    loss2 = kl_div_loss(p2, q2, row_tile=8)  # force 4 grid blocks
    jax.block_until_ready(loss2)
    ref2 = _reference(p2, q2)
    assert jnp.allclose(loss2, ref2, rtol=1e-3, atol=1e-6), (loss2, ref2)

    # 3) Non-dividing batch: cdiv grid + in-kernel row masking (last block overhangs).
    B3, N3 = 20, 128
    p3 = jax.random.normal(k5, (B3, N3), dtype=jnp.float32)
    q3 = jax.random.normal(k6, (B3, N3), dtype=jnp.float32)
    loss3 = kl_div_loss(p3, q3, row_tile=8)  # 3 blocks, 4 masked rows in the last
    jax.block_until_ready(loss3)
    ref3 = _reference(p3, q3)
    assert jnp.allclose(loss3, ref3, rtol=1e-3, atol=1e-6), (loss3, ref3)

    # 4) bf16 inputs: in-kernel upcast, 16-row sublane packing, auto tile (2 blocks).
    B4, N4 = 32, 128
    p4 = jax.random.normal(k7, (B4, N4), dtype=jnp.float32).astype(jnp.bfloat16)
    q4 = jax.random.normal(k8, (B4, N4), dtype=jnp.float32).astype(jnp.bfloat16)
    loss4 = kl_div_loss(p4, q4)
    jax.block_until_ready(loss4)
    ref4 = _reference(p4, q4)
    assert jnp.allclose(loss4, ref4, rtol=1e-3, atol=1e-5), (loss4, ref4)

    print("KERNEL_OK")
</pallas_src>

<mosaic_0001>
module attributes {stable_mosaic.version = 11 : i64} {
  func.func @_kl_div_kernel(%arg0: i32, %arg1: memref<8x128xf32, #tpu.memory_space<vmem>>, %arg2: memref<8x128xf32, #tpu.memory_space<vmem>>, %arg3: memref<1x128xf32, #tpu.memory_space<vmem>>) attributes {dimension_semantics = [#tpu.dimension_semantics<parallel>], iteration_bounds = array<i64: 1>, scalar_prefetch = 0 : i64, scratch_operands = 0 : i64, tpu.core_type = #tpu.core_type<tc>, window_params = [{transform_indices = @transform_0, window_bounds = array<i64: 8, 128>}, {transform_indices = @transform_1, window_bounds = array<i64: 8, 128>}, {transform_indices = @transform_2, window_bounds = array<i64: 1, 128>}]} {
    %c0 = arith.constant 0 : index
    %c0_0 = arith.constant 0 : index
    %0 = vector.load %arg1[%c0, %c0_0] : memref<8x128xf32, #tpu.memory_space<vmem>>, vector<8x128xf32>
    %c0_1 = arith.constant 0 : index
    %c0_2 = arith.constant 0 : index
    %1 = vector.load %arg2[%c0_1, %c0_2] : memref<8x128xf32, #tpu.memory_space<vmem>>, vector<8x128xf32>
    %cst = arith.constant dense<0xFF800000> : vector<8xf32>
    %2 = vector.multi_reduction <maximumf>, %0, %cst [1] : vector<8x128xf32> to vector<8xf32>
    %3 = vector.shape_cast %2 : vector<8xf32> to vector<8x1xf32>
    %4 = vector.broadcast %3 : vector<8x1xf32> to vector<8x128xf32>
    %5 = arith.subf %0, %4 : vector<8x128xf32>
    %cst_3 = arith.constant dense<0xFF800000> : vector<8xf32>
    %6 = vector.multi_reduction <maximumf>, %1, %cst_3 [1] : vector<8x128xf32> to vector<8xf32>
    %7 = vector.shape_cast %6 : vector<8xf32> to vector<8x1xf32>
    %8 = vector.broadcast %7 : vector<8x1xf32> to vector<8x128xf32>
    %9 = arith.subf %1, %8 : vector<8x128xf32>
    %10 = math.exp %5 : vector<8x128xf32>
    %cst_4 = arith.constant dense<0.000000e+00> : vector<8xf32>
    %11 = vector.multi_reduction <add>, %10, %cst_4 [1] : vector<8x128xf32> to vector<8xf32>
    %12 = vector.shape_cast %11 : vector<8xf32> to vector<8x1xf32>
    %13 = math.exp %9 : vector<8x128xf32>
    %cst_5 = arith.constant dense<0.000000e+00> : vector<8xf32>
    %14 = vector.multi_reduction <add>, %13, %cst_5 [1] : vector<8x128xf32> to vector<8xf32>
    %15 = vector.shape_cast %14 : vector<8xf32> to vector<8x1xf32>
    %16 = arith.subf %5, %9 : vector<8x128xf32>
    %17 = arith.mulf %10, %16 : vector<8x128xf32>
    %cst_6 = arith.constant dense<0.000000e+00> : vector<8xf32>
    %18 = vector.multi_reduction <add>, %17, %cst_6 [1] : vector<8x128xf32> to vector<8xf32>
    %19 = vector.shape_cast %18 : vector<8xf32> to vector<8x1xf32>
    %20 = tpu.reciprocal %12 {approx = true} : vector<8x1xf32> -> vector<8x1xf32>
    %21 = arith.mulf %12, %20 : vector<8x1xf32>
    %cst_7 = arith.constant 2.000000e+00 : f32
    %22 = vector.broadcast %cst_7 : f32 to vector<8x1xf32>
    %23 = arith.subf %22, %21 : vector<8x1xf32>
    %24 = arith.mulf %20, %23 : vector<8x1xf32>
    %25 = arith.mulf %19, %24 : vector<8x1xf32>
    %26 = math.log %12 : vector<8x1xf32>
    %27 = math.log %15 : vector<8x1xf32>
    %28 = arith.subf %26, %27 : vector<8x1xf32>
    %29 = arith.subf %25, %28 : vector<8x1xf32>
    %c8_i32 = arith.constant 8 : i32
    %30 = arith.muli %arg0, %c8_i32 : i32
    %31 = tpu.iota {dimensions = array<i32: 0>} : vector<8x1xi32>
    %32 = vector.broadcast %30 : i32 to vector<8x1xi32>
    %33 = arith.addi %32, %31 : vector<8x1xi32>
    %c8_i32_8 = arith.constant 8 : i32
    %34 = vector.broadcast %c8_i32_8 : i32 to vector<8x1xi32>
    %35 = arith.cmpi slt, %33, %34 : vector<8x1xi32>
    %cst_9 = arith.constant 0.000000e+00 : f32
    %36 = vector.broadcast %cst_9 : f32 to vector<8x1xf32>
    %37 = arith.select %35, %29, %36 : vector<8x1xi1>, vector<8x1xf32>
    %38 = vector.shape_cast %37 : vector<8x1xf32> to vector<1x8x1xf32>
    %cst_10 = arith.constant dense<0.000000e+00> : vector<1xf32>
    %39 = vector.multi_reduction <add>, %38, %cst_10 [1, 2] : vector<1x8x1xf32> to vector<1xf32>
    %40 = vector.shape_cast %39 : vector<1xf32> to vector<1x1x1xf32>
    %41 = vector.extract %40[0, 0, 0] : f32 from vector<1x1x1xf32>
    %42 = vector.broadcast %41 : f32 to vector<1x128xf32>
    %c0_11 = arith.constant 0 : index
    %c0_12 = arith.constant 0 : index
    %43 = vector.load %arg3[%c0_11, %c0_12] : memref<1x128xf32, #tpu.memory_space<vmem>>, vector<1x128xf32>
    tpu.vector_store %arg3[%c0_11, %c0_12], %42 {strides = array<i32>} : memref<1x128xf32, #tpu.memory_space<vmem>>, vector<1x128xf32>,
    return
  }
  func.func @transform_0(%arg0: i32) -> (i32, i32) {
    %c0_i32 = arith.constant 0 : i32
    %c0_i32_0 = arith.constant 0 : i32
    return %arg0, %c0_i32 : i32, i32
  }
  func.func @transform_1(%arg0: i32) -> (i32, i32) {
    %c0_i32 = arith.constant 0 : i32
    %c0_i32_0 = arith.constant 0 : i32
    return %arg0, %c0_i32 : i32, i32
  }
  func.func @transform_2(%arg0: i32) -> (i32, i32) {
    %c0_i32 = arith.constant 0 : i32
    %c0_i32_0 = arith.constant 0 : i32
    return %c0_i32, %arg0 : i32, i32
  }
}

</mosaic_0001>

<bundles_post_ra>
// kernel: tpu_custom_call.1
= control target key start
LH: loop header
LB: loop body
LE: loop exit
PB: predicated region body
PF: predicated region fallthrough
CT: control target
= control target key end

     0   :  { %7 = vsyncpa [#allocation3], 0  ;;  %s244_s0 = inlined_call_operand.hbm [shape: f32[8,128], index: 0, kind: input, shape index: {}]   ;;  %s245_s1 = inlined_call_operand.hbm [shape: f32[8,128], index: 1, kind: input, shape index: {}]   ;;  %s246_s2 = inlined_call_operand.hbm [shape: f32[1,128], index: 2, kind: output, shape index: {}]  }
   0x1   :  { %8 = vsyncpa [#allocation6], 0 }
   0x2   :  { %9 = vsyncpa [#allocation4], 0  ;;  %s190_s9 = smov [#allocation2]   ;;  %s191_s11 = smov [#allocation5]  }
   0x3   :  { %s16_s10 = sshll.u32 %s190_s9, 4  ;;  %s26_s12 = sshll.u32 %s191_s11, 4  ;;  %s17_s10 = int_to_ptr.vmem [resolvable:$true] %s16_s10  ;;  %s27_s12 = int_to_ptr.vmem [resolvable:$true] %s26_s12 }
   0x4   :  { %s118_s15 = scalar_lea.hbm %s244_s0, 128 }
   0x5   :  { %p119_p0 = scmp.ne.s32.totalorder %s244_s0, %s118_s15  ;;  %p122_p1 = scmp.lt.u32.totalorder %s118_s15, %s244_s0 }
   0x7   :  { %p124_p2 = pnand %p122_p1, %p119_p0 }
   0x9   :  { %127 = shalt.err (!%p124_p2)
}
   0xa   :  { %s128_s20 = scalar_lea.vmem %s17_s10, 128  ;;  %p133_p4 = scmp.lt.s32.totalorder %s17_s10, %s17_s10 }
   0xb   :  { %p129_p3 = scmp.ne.s32.totalorder %s17_s10, %s128_s20  ;;  %p134_p5 = scmp.lt.s32.totalorder %s128_s20, %s128_s20 }
   0xd   :  { %p135_p6 = por %p134_p5, %p133_p4 }
   0xf   :  { %p136_p7 = pnand %p135_p6, %p129_p3 }
  0x11   :  { %139 = shalt.err (!%p136_p7)
}
  0x12   :  { %19 = dma.hbm_to_vmem [thread:$0]  %s244_s0, 128, %s17_s10, [#allocation3]  }
  0x13   :  { %s140_s25 = scalar_lea.hbm %s245_s1, 128 }
  0x14   :  { %p141_p8 = scmp.ne.s32.totalorder %s245_s1, %s140_s25  ;;  %p144_p9 = scmp.lt.u32.totalorder %s140_s25, %s245_s1 }
  0x16   :  { %p146_p10 = pnand %p144_p9, %p141_p8 }
  0x18   :  { %149 = shalt.err (!%p146_p10)
}
  0x19   :  { %s150_s30 = scalar_lea.vmem %s27_s12, 128  ;;  %p155_p12 = scmp.lt.s32.totalorder %s27_s12, %s27_s12 }
  0x1a   :  { %p151_p11 = scmp.ne.s32.totalorder %s27_s12, %s150_s30  ;;  %p156_p13 = scmp.lt.s32.totalorder %s150_s30, %s150_s30 }
  0x1c   :  { %p157_p0 = por %p156_p13, %p155_p12 }
  0x1e   :  { %p158_p1 = pnand %p157_p0, %p151_p11 }
  0x20   :  { %161 = shalt.err (!%p158_p1)
}
  0x21   :  { %29 = dma.hbm_to_vmem [thread:$0]  %s245_s1, 128, %s27_s12, [#allocation6]  }
  0x22   :  { %184 = dma.done.wait [#allocation3], 128  }
  0x23   :  { %185 = vsyncadd [#allocation3], 4294967168 }
  0x24   :  { %186 = dma.done.wait [#allocation6], 128  }
  0x25   :  { %187 = vsyncadd [#allocation6], 4294967168  ;;  %v36_v0 = vld [vmem:[#allocation2] sm:$0xff]  ;;  %v37_v1 = vld [vmem:[#allocation5] sm:$0xff]  ;;  %vm74_vm0 = vcmask 7168   ;;  %s192_s1 = smov [#allocation7]  }
  0x26   :  { %38 = vmax.xlane.f32.xlu0 %v36_v0  ;;  %s93_s4 = sshll.u32 %s192_s1, 4  ;;  %s94_s4 = int_to_ptr.vmem [resolvable:$true] %s93_s4 }
  0x27   :  { %s162_s6 = scalar_lea.vmem %s94_s4, 16  ;;  %s166_s7 = scalar_lea.vmem %s94_s4, 32 }
  0x28   :  { %p163_p2 = scmp.ne.s32.totalorder %s94_s4, %s162_s6  ;;  %p167_p3 = scmp.lt.s32.totalorder %s94_s4, %s94_s4 }
  0x29   :  { %p168_p4 = scmp.lt.s32.totalorder %s166_s7, %s162_s6 }
  0x2a   :  { %41 = vmax.xlane.f32.xlu0 %v37_v1 }
  0x2b   :  { %p169_p5 = por %p168_p4, %p167_p3 }
  0x2d   :  { %p170_p6 = pnand %p169_p5, %p163_p2 }
  0xb3   :  { %v39_v2 = vpop.xlane.xlu0 %38 }
  0xb4   :  { %v40_v3 = vsub.f32 %v36_v0, %v39_v2 }
  0xb6   :  { %v44_v4 = vmul.f32 1.442695, %v40_v3 }
  0xb7   :  { %v42_v5 = vpop.xlane.xlu0 %41 }
  0xb8   :  { %108 = vpow2.f32 %v44_v4  ;;  %v43_v6 = vsub.f32 %v37_v1, %v42_v5 }
  0xba   :  { %v48_v7 = vmul.f32 1.442695, %v43_v6  ;;  %v52_v8 = vsub.f32 %v40_v3, %v43_v6 }
  0xbc   :  { %110 = vpow2.f32 %v48_v7 }
  0xc2   :  { %v109_v9 = vpop.eup %108 }
  0xc3   :  { %46 = vadd.xlane.f32.xlu1 %v109_v9  ;;  %v53_v10 = vmul.f32 %v109_v9, %v52_v8 }
  0xc5   :  { %54 = vadd.xlane.f32.xlu0 %v53_v10 }
  0xc6   :  { %v111_v11 = vpop.eup %110 }
  0xc7   :  { %50 = vadd.xlane.f32.xlu1 %v111_v11 }
 0x150   :  { %v47_v12 = vpop.xlane.xlu1 %46 }
 0x151   :  { %112 = vrcp.f32 %v47_v12 }
 0x152   :  { %114 = vlog2.f32 %v47_v12  ;;  %v55_v22 = vpop.xlane.xlu0 %54 }
 0x154   :  { %v51_v13 = vpop.xlane.xlu1 %50 }
 0x155   :  { %116 = vlog2.f32 %v51_v13 }
 0x15b   :  { %v113_v14 = vpop.eup %112 }
 0x15c   :  { %v57_v15 = vmul.f32 %v113_v14, %v47_v12  ;;  %v115_v16 = vpop.eup %114 }
 0x15d   :  { %v62_v19 = vmul.f32 0.6931472, %v115_v16 }
 0x15e   :  { %v58_v17 = vsub.f32 2.0, %v57_v15 }
 0x15f   :  { %v117_v18 = vpop.eup %116 }
 0x160   :  { %v59_v20 = vmul.f32 %v113_v14, %v58_v17  ;;  %v64_v21 = vmul.f32 0.6931472, %v117_v18 }
 0x162   :  { %v60_v23 = vmul.f32 %v59_v20, %v55_v22  ;;  %v65_v24 = vsub.f32 %v62_v19, %v64_v21 }
 0x164   :  { %v66_v25 = vsub.f32 %v60_v23, %v65_v24 }
 0x166   :  { %v75_v26 = vsel %vm74_vm0, %v66_v25, 0.0 }
 0x167   :  { %76 = vadd.xlane.f32.xlu1 %v75_v26 }
 0x1f4   :  { %v77_v27 = vpop.xlane.xlu1 %76 }
 0x1f5   :  { %v78_v28 = vrot.slane %v77_v27, 4 }
 0x1f7   :  { %v79_v29 = vadd.f32 %v78_v28, %v77_v27 }
 0x1f9   :  { %v80_v30 = vrot.slane %v79_v29, 2 }
 0x1fb   :  { %v81_v31 = vadd.f32 %v80_v30, %v79_v29 }
 0x1fd   :  { %v82_v32 = vrot.slane %v81_v31, 1 }
 0x1ff   :  { %v83_v33 = vadd.f32 %v82_v32, %v81_v31 }
 0x201   :  { %103 = vpush %v83_v33 }
 0x232   :  { %s104_s5 = spop %103 }
 0x233   :  { %v85_v34 = vstv %s104_s5 }
 0x234   :  { %86 = vst [vmem:[#allocation7] sm:$0x1] %v85_v34 }
 0x235   :  { %173 = shalt.err (!%p170_p6)
}
 0x236   :  { %s174_s10 = scalar_lea.hbm %s246_s2, 16 }
 0x237   :  { %p175_p7 = scmp.ne.s32.totalorder %s246_s2, %s174_s10  ;;  %p178_p8 = scmp.lt.u32.totalorder %s174_s10, %s246_s2 }
 0x239   :  { %p180_p9 = pnand %p178_p8, %p175_p7 }
 0x23b   :  { %183 = shalt.err (!%p180_p9)
}
 0x23c   :  { %96 = dma.vmem_to_hbm [thread:$0]  %s94_s4, 16, %s246_s2, [#allocation4]  }
 0x23d   :  { %188 = dma.done.wait [#allocation4], 16  }
 0x23e   :  { %189 = vsyncadd [#allocation4], 4294967280 }
 0x23f   :  { %100 = vsyncpa [#allocation3], 1 }
 0x240   :  { %101 = vsyncpa [#allocation6], 1 }
 0x241   :  { %102 = vsyncpa [#allocation4], 1 }

</bundles_post_ra>
